<compile_context>
chip_gen: v6e
topology: v6e:2x2x1
jax: 0.10.0
libtpu: 0.0.40
codegen_flags: <defaults>
</compile_context>

<pallas_src>
import math
import functools

import jax
import jax.numpy as jnp
from jax.experimental import pallas as pl
from jax.experimental.pallas import tpu as pltpu

LAYER_NORM_EPS = 1e-12


def _gelu_tanh(x):
    # tanh-approximate GELU (EUP tanh); ~1e-3 abs diff vs torch's exact erf GELU.
    c = math.sqrt(2.0 / math.pi)
    return 0.5 * x * (1.0 + jnp.tanh(c * (x + 0.044715 * (x * x * x))))


def _layer_norm(x, gamma, beta, eps):
    mu = jnp.mean(x, axis=-1, keepdims=True)
    xc = x - mu
    var = jnp.mean(xc * xc, axis=-1, keepdims=True)
    return xc * jax.lax.rsqrt(var + eps) * gamma + beta


# --------------------------------------------------------------------------- #
# Encoder kernel: grid = (batch_tiles, n_layers)                              #
# --------------------------------------------------------------------------- #
def _encoder_kernel(x_ref, addmask_ref, maskf3_ref, wqkvo_ref, w1_ref, w2_ref,
                    biash_ref, biasi_ref, pooled_ref, h_ref,
                    *, n_heads, eps, seq_len):
    layer = pl.program_id(1)

    # Residual stream lives in f32 VMEM scratch across the layer grid axis.
    @pl.when(layer == 0)
    def _init():
        h_ref[...] = x_ref[...].astype(jnp.float32)

    TB, L, H = h_ref.shape
    N = TB * L
    d_head = H // n_heads
    scale = 1.0 / math.sqrt(d_head)

    x3 = h_ref[...]                                   # [TB, L, H] f32
    x2 = x3.reshape(N, H)                             # leading-dim merge: layout-free
    xb = x2.astype(jnp.bfloat16)

    # Packed small params: one DMA each instead of 10 tiny ones.
    biash = biash_ref[...]                            # [9, H] f32
    bq, bk, bv, bo = biash[0:1], biash[1:2], biash[2:3], biash[3:4]
    g1, be1 = biash[4:5], biash[5:6]
    bf2 = biash[6:7]
    g2, be2 = biash[7:8], biash[8:9]
    bf1 = biasi_ref[...]                              # [1, inner]

    wq = wqkvo_ref[0]                                 # [H, H] bf16 (leading-dim index: free)
    wk = wqkvo_ref[1]
    wv = wqkvo_ref[2]
    wo = wqkvo_ref[3]

    # Dense 2-D projections: bf16 operands, f32 MXU accumulation.
    q2 = jnp.dot(xb, wq, preferred_element_type=jnp.float32) + bq
    k2 = jnp.dot(xb, wk, preferred_element_type=jnp.float32) + bk
    v2 = jnp.dot(xb, wv, preferred_element_type=jnp.float32) + bv

    # bf16 casts hoisted out of the head loop.
    qb = q2.astype(jnp.bfloat16).reshape(TB, L, H)
    kb = k2.astype(jnp.bfloat16).reshape(TB, L, H)
    vb = v2.astype(jnp.bfloat16).reshape(TB, L, H)

    # Additive mask broadcast materialized once per layer step.
    mask_b = jnp.broadcast_to(addmask_ref[...], (TB, L, L))

    # Per-head scores/context.  No lane-axis concatenate: each head's context is
    # pushed through its Wo row-block and accumulated into one f32 buffer.
    attn2 = jnp.zeros((N, H), jnp.float32)
    for hidx in range(n_heads):
        lo = hidx * d_head
        qh = qb[:, :, lo:lo + d_head]
        kh = kb[:, :, lo:lo + d_head]
        vh = vb[:, :, lo:lo + d_head]
        s = jnp.einsum('bld,bmd->blm', qh, kh,
                       preferred_element_type=jnp.float32) * scale + mask_b
        s = s - jnp.max(s, axis=-1, keepdims=True)    # stable softmax
        p = jnp.exp(s)
        p = p * pl.reciprocal(jnp.sum(p, axis=-1, keepdims=True), approx=True)
        ctx = jnp.einsum('blm,bmd->bld', p.astype(jnp.bfloat16), vh,
                         preferred_element_type=jnp.float32)      # [TB, L, dh]
        ctx2 = ctx.astype(jnp.bfloat16).reshape(N, d_head)
        wo_h = wo[lo:lo + d_head, :]                  # static sublane slice of weights
        attn2 = attn2 + jnp.dot(ctx2, wo_h, preferred_element_type=jnp.float32)
    attn2 = attn2 + bo

    h1 = _layer_norm(attn2 + x2, g1, be1, eps)        # [N, H] f32

    f = _gelu_tanh(jnp.dot(h1.astype(jnp.bfloat16), w1_ref[...],
                           preferred_element_type=jnp.float32) + bf1)
    f2 = jnp.dot(f.astype(jnp.bfloat16), w2_ref[...],
                 preferred_element_type=jnp.float32) + bf2
    out2 = _layer_norm(f2 + h1, g2, be2, eps)
    h_ref[...] = out2.reshape(TB, L, H)

    # Masked mean-pool fused on the last layer step; only [TB,H] ever hits HBM.
    # mean_L(masked_out @ emb^T) == (sum_L(masked_out)/L) @ emb^T, so pooling here
    # and doing the vocab matmul in the (V-tiled) head kernel is exact.
    @pl.when(layer == pl.num_programs(1) - 1)
    def _pool():
        m3 = maskf3_ref[...]                          # [TB, L, 1] {0,1} float
        out3 = out2.reshape(TB, L, H)
        pooled_ref[...] = jnp.sum(out3 * m3, axis=1) * (1.0 / seq_len)


# --------------------------------------------------------------------------- #
# Propensity head kernel: grid = (batch_tiles, vocab_tiles), online LSE       #
# --------------------------------------------------------------------------- #
def _head_kernel(pooled_ref, embT_ref, tgt_ref, score_ref, nll_ref,
                 m_ref, l_ref, t_ref, *, tile_v):
    vi = pl.program_id(1)

    @pl.when(vi == 0)
    def _init():
        m_ref[...] = jnp.full_like(m_ref, -jnp.inf)
        l_ref[...] = jnp.zeros_like(l_ref)
        t_ref[...] = jnp.zeros_like(t_ref)

    # [TB, TV] logits for this vocab tile (V is the lane-dense output dim).
    logits = jnp.dot(pooled_ref[...].astype(jnp.bfloat16), embT_ref[...],
                     preferred_element_type=jnp.float32)

    # Online max / sum-exp (LSE) accumulation.
    m_new = jnp.maximum(m_ref[...], jnp.max(logits, axis=-1, keepdims=True))
    alpha = jnp.exp(m_ref[...] - m_new)
    l_ref[...] = alpha * l_ref[...] + jnp.sum(jnp.exp(logits - m_new),
                                              axis=-1, keepdims=True)
    m_ref[...] = m_new

    # Online target-logit pick (on-chip one-hot, no full softmax materialization).
    vid = vi * tile_v + jax.lax.broadcasted_iota(jnp.int32, logits.shape, 1)
    onehot = (vid == tgt_ref[...]).astype(jnp.float32)
    t_ref[...] = t_ref[...] + jnp.sum(logits * onehot, axis=-1, keepdims=True)

    @pl.when(vi == pl.num_programs(1) - 1)
    def _final():
        lse = m_ref[...] + jnp.log(l_ref[...])
        score_ref[...] = jnp.exp(t_ref[...] - lse)    # softmax prob of target
        nll_ref[...] = lse - t_ref[...]               # per-example CE


# --------------------------------------------------------------------------- #
# Wrapper                                                                     #
# --------------------------------------------------------------------------- #
def propensity_estimation_forward(item_seq_emb, target_item, item_emb_weight,
                                  masked_item_seq, params, n_heads,
                                  *, batch_tile=8, vocab_tile=512):
    B, L, H = item_seq_emb.shape
    V = item_emb_weight.shape[0]
    layers = params['layers']
    NL = len(layers)
    inner = layers[0]['w1'].shape[1]

    tb = B if B < batch_tile else batch_tile
    assert B % tb == 0, "batch must be divisible by the batch tile"
    nb = B // tb
    tv = vocab_tile if (V % vocab_tile == 0) else V
    nv = V // tv

    # get_attention_mask glue (bidirectional additive mask) + pooling mask.
    maskf = (masked_item_seq > 0).astype(jnp.float32)          # [B, L]
    addmask = ((1.0 - maskf) * -10000.0)[:, None, :]           # [B, 1, L]
    maskf3 = maskf[:, :, None]                                 # [B, L, 1]

    # Packed per-layer params: 3 weight tensors + 2 bias tensors (8 DMAs/step total).
    wqkvo = jnp.stack([jnp.stack([lp['wq'], lp['wk'], lp['wv'], lp['wo']], axis=0)
                       for lp in layers], axis=0).astype(jnp.bfloat16)   # [NL,4,H,H]
    w1 = jnp.stack([lp['w1'] for lp in layers], axis=0).astype(jnp.bfloat16)  # [NL,H,I]
    w2 = jnp.stack([lp['w2'] for lp in layers], axis=0).astype(jnp.bfloat16)  # [NL,I,H]
    bias_keys = ('bq', 'bk', 'bv', 'bo', 'g1', 'be1', 'bf2', 'g2', 'be2')
    biash = jnp.stack([jnp.concatenate([lp[k] for k in bias_keys], axis=0)
                       for lp in layers], axis=0).astype(jnp.float32)    # [NL,9,H]
    biasi = jnp.stack([lp['bf1'] for lp in layers], axis=0).astype(jnp.float32)  # [NL,1,I]

    x_bf16 = item_seq_emb.astype(jnp.bfloat16)

    enc_kernel = functools.partial(_encoder_kernel, n_heads=n_heads,
                                   eps=LAYER_NORM_EPS, seq_len=L)

    # TODO(synk): on v6e (128 MiB VMEM) a larger batch tile + pl.Buffered(3) on the
    # stacked weight specs would deepen weight streaming further.
    pooled = pl.pallas_call(
        enc_kernel,
        out_shape=jax.ShapeDtypeStruct((B, H), jnp.float32),
        grid=(nb, NL),
        in_specs=[
            pl.BlockSpec((tb, L, H), lambda b, l: (b, 0, 0)),
            pl.BlockSpec((tb, 1, L), lambda b, l: (b, 0, 0)),
            pl.BlockSpec((tb, L, 1), lambda b, l: (b, 0, 0)),
            pl.BlockSpec((None, 4, H, H), lambda b, l: (l, 0, 0, 0)),
            pl.BlockSpec((None, H, inner), lambda b, l: (l, 0, 0)),
            pl.BlockSpec((None, inner, H), lambda b, l: (l, 0, 0)),
            pl.BlockSpec((None, 9, H), lambda b, l: (l, 0, 0)),
            pl.BlockSpec((None, 1, inner), lambda b, l: (l, 0, 0)),
        ],
        out_specs=pl.BlockSpec((tb, H), lambda b, l: (b, 0)),
        scratch_shapes=[pltpu.VMEM((tb, L, H), jnp.float32)],
        compiler_params=pltpu.CompilerParams(
            dimension_semantics=("parallel", "arbitrary"),
            vmem_limit_bytes=40 * 1024 * 1024),
    )(x_bf16, addmask, maskf3, wqkvo, w1, w2, biash, biasi)

    embT = jnp.transpose(item_emb_weight).astype(jnp.bfloat16)   # [H, V]
    tgt = target_item.astype(jnp.int32).reshape(B, 1)

    head_kernel = functools.partial(_head_kernel, tile_v=tv)

    score, nll = pl.pallas_call(
        head_kernel,
        out_shape=(jax.ShapeDtypeStruct((B, 1), jnp.float32),
                   jax.ShapeDtypeStruct((B, 1), jnp.float32)),
        grid=(nb, nv),
        in_specs=[
            pl.BlockSpec((tb, H), lambda b, v: (b, 0)),
            pl.BlockSpec((H, tv), lambda b, v: (0, v)),
            pl.BlockSpec((tb, 1), lambda b, v: (b, 0)),
        ],
        out_specs=(pl.BlockSpec((tb, 1), lambda b, v: (b, 0)),
                   pl.BlockSpec((tb, 1), lambda b, v: (b, 0))),
        scratch_shapes=[pltpu.VMEM((tb, 1), jnp.float32),
                        pltpu.VMEM((tb, 1), jnp.float32),
                        pltpu.VMEM((tb, 1), jnp.float32)],
        compiler_params=pltpu.CompilerParams(
            dimension_semantics=("parallel", "arbitrary"),
            vmem_limit_bytes=40 * 1024 * 1024),
    )(pooled, embT, tgt)

    loss = jnp.mean(nll)   # CrossEntropyLoss default 'mean' reduction over batch
    # TODO(synk): self.Linear(hidden_size, 1) exists in __init__ but is unused in forward.
    return score, loss


def init_params(key, n_layers, hidden, inner):
    layers = []
    for lk in jax.random.split(key, n_layers):
        ks = jax.random.split(lk, 6)
        nrm = lambda k, shape: jax.random.normal(k, shape, jnp.float32) * 0.02
        layers.append(dict(
            wq=nrm(ks[0], (hidden, hidden)), bq=jnp.zeros((1, hidden), jnp.float32),
            wk=nrm(ks[1], (hidden, hidden)), bk=jnp.zeros((1, hidden), jnp.float32),
            wv=nrm(ks[2], (hidden, hidden)), bv=jnp.zeros((1, hidden), jnp.float32),
            wo=nrm(ks[3], (hidden, hidden)), bo=jnp.zeros((1, hidden), jnp.float32),
            g1=jnp.ones((1, hidden), jnp.float32), be1=jnp.zeros((1, hidden), jnp.float32),
            w1=nrm(ks[4], (hidden, inner)), bf1=jnp.zeros((1, inner), jnp.float32),
            w2=nrm(ks[5], (inner, hidden)), bf2=jnp.zeros((1, hidden), jnp.float32),
            g2=jnp.ones((1, hidden), jnp.float32), be2=jnp.zeros((1, hidden), jnp.float32),
        ))
    return {'layers': layers}


if __name__ == "__main__":
    # config: n_layers=2, n_heads=2, hidden_size=32, inner_size=64, hidden_act='gelu',
    #         layer_norm_eps=1e-12, dropouts=0 (eval)
    B, L, H, NH, INNER, V, NL = 2, 8, 32, 2, 64, 64, 2

    key = jax.random.PRNGKey(0)
    k1, k2, k3, k4, k5 = jax.random.split(key, 5)
    params = init_params(k1, NL, H, INNER)

    item_seq_emb = jax.random.normal(k2, (B, L, H), jnp.float32)
    item_emb_weight = jax.random.normal(k3, (V, H), jnp.float32) * 0.02
    masked_item_seq = jax.random.randint(k4, (B, L), 0, V).astype(jnp.int32)
    masked_item_seq = masked_item_seq.at[:, -2:].set(0)     # padding positions
    target_item = jax.random.randint(k5, (B,), 1, V).astype(jnp.int32)

    ips_score, loss = propensity_estimation_forward(
        item_seq_emb, target_item, item_emb_weight, masked_item_seq, params, NH)
    jax.block_until_ready((ips_score, loss))

    assert ips_score.shape == (B, 1) and loss.shape == ()
    assert bool(jnp.all(jnp.isfinite(ips_score))) and bool(jnp.isfinite(loss))
    print("KERNEL_OK")
</pallas_src>

<mosaic_0001>
module attributes {stable_mosaic.version = 11 : i64} {
  func.func @_encoder_kernel(%arg0: i32, %arg1: i32, %arg2: memref<2x8x32xbf16, #tpu.memory_space<vmem>>, %arg3: memref<2x1x8xf32, #tpu.memory_space<vmem>>, %arg4: memref<2x8x1xf32, #tpu.memory_space<vmem>>, %arg5: memref<1x4x32x32xbf16, #tpu.memory_space<vmem>>, %arg6: memref<1x32x64xbf16, #tpu.memory_space<vmem>>, %arg7: memref<1x64x32xbf16, #tpu.memory_space<vmem>>, %arg8: memref<1x9x32xf32, #tpu.memory_space<vmem>>, %arg9: memref<1x1x64xf32, #tpu.memory_space<vmem>>, %arg10: memref<2x32xf32, #tpu.memory_space<vmem>>, %arg11: memref<2x8x32xf32, #tpu.memory_space<vmem>>) attributes {dimension_semantics = [#tpu.dimension_semantics<parallel>, #tpu.dimension_semantics<arbitrary>], iteration_bounds = array<i64: 1, 2>, scalar_prefetch = 0 : i64, scratch_operands = 1 : i64, tpu.core_type = #tpu.core_type<tc>, window_params = [{transform_indices = @transform_0, window_bounds = array<i64: 2, 8, 32>}, {transform_indices = @transform_1, window_bounds = array<i64: 2, 1, 8>}, {transform_indices = @transform_2, window_bounds = array<i64: 2, 8, 1>}, {transform_indices = @transform_3, window_bounds = array<i64: 1, 4, 32, 32>}, {transform_indices = @transform_4, window_bounds = array<i64: 1, 32, 64>}, {transform_indices = @transform_5, window_bounds = array<i64: 1, 64, 32>}, {transform_indices = @transform_6, window_bounds = array<i64: 1, 9, 32>}, {transform_indices = @transform_7, window_bounds = array<i64: 1, 1, 64>}, {transform_indices = @transform_8, window_bounds = array<i64: 2, 32>}]} {
    %c0_i32 = arith.constant 0 : i32
    %0 = arith.cmpi eq, %arg1, %c0_i32 : i32
    %1 = arith.extui %0 : i1 to i32
    %c0_i32_0 = arith.constant 0 : i32
    %2 = arith.cmpi ne, %1, %c0_i32_0 : i32
    scf.if %2 {
      %c0_66 = arith.constant 0 : index
      %c0_67 = arith.constant 0 : index
      %c0_68 = arith.constant 0 : index
      %168 = vector.load %arg2[%c0_66, %c0_67, %c0_68] : memref<2x8x32xbf16, #tpu.memory_space<vmem>>, vector<2x8x32xbf16>
      %169 = arith.extf %168 : vector<2x8x32xbf16> to vector<2x8x32xf32>
      %c0_69 = arith.constant 0 : index
      %c0_70 = arith.constant 0 : index
      %c0_71 = arith.constant 0 : index
      %170 = vector.load %arg11[%c0_69, %c0_70, %c0_71] : memref<2x8x32xf32, #tpu.memory_space<vmem>>, vector<2x8x32xf32>
      tpu.vector_store %arg11[%c0_69, %c0_70, %c0_71], %169 {strides = array<i32>} : memref<2x8x32xf32, #tpu.memory_space<vmem>>, vector<2x8x32xf32>,
    } else {
    }
    %c0 = arith.constant 0 : index
    %c0_1 = arith.constant 0 : index
    %c0_2 = arith.constant 0 : index
    %3 = vector.load %arg11[%c0, %c0_1, %c0_2] : memref<2x8x32xf32, #tpu.memory_space<vmem>>, vector<2x8x32xf32>
    %4 = vector.shape_cast %3 : vector<2x8x32xf32> to vector<16x32xf32>
    %5 = arith.truncf %4 : vector<16x32xf32> to vector<16x32xbf16>
    %c0_3 = arith.constant 0 : index
    %c0_4 = arith.constant 0 : index
    %c0_5 = arith.constant 0 : index
    %6 = vector.load %arg8[%c0_3, %c0_4, %c0_5] : memref<1x9x32xf32, #tpu.memory_space<vmem>>, vector<1x9x32xf32>
    %7 = vector.shape_cast %6 : vector<1x9x32xf32> to vector<9x32xf32>
    %8 = vector.extract_strided_slice %7 {offsets = [0, 0], sizes = [1, 32], strides = [1, 1]} : vector<9x32xf32> to vector<1x32xf32>
    %9 = vector.extract_strided_slice %7 {offsets = [1, 0], sizes = [1, 32], strides = [1, 1]} : vector<9x32xf32> to vector<1x32xf32>
    %10 = vector.extract_strided_slice %7 {offsets = [2, 0], sizes = [1, 32], strides = [1, 1]} : vector<9x32xf32> to vector<1x32xf32>
    %11 = vector.extract_strided_slice %7 {offsets = [3, 0], sizes = [1, 32], strides = [1, 1]} : vector<9x32xf32> to vector<1x32xf32>
    %12 = vector.extract_strided_slice %7 {offsets = [4, 0], sizes = [1, 32], strides = [1, 1]} : vector<9x32xf32> to vector<1x32xf32>
    %13 = vector.extract_strided_slice %7 {offsets = [5, 0], sizes = [1, 32], strides = [1, 1]} : vector<9x32xf32> to vector<1x32xf32>
    %14 = vector.extract_strided_slice %7 {offsets = [6, 0], sizes = [1, 32], strides = [1, 1]} : vector<9x32xf32> to vector<1x32xf32>
    %15 = vector.extract_strided_slice %7 {offsets = [7, 0], sizes = [1, 32], strides = [1, 1]} : vector<9x32xf32> to vector<1x32xf32>
    %16 = vector.extract_strided_slice %7 {offsets = [8, 0], sizes = [1, 32], strides = [1, 1]} : vector<9x32xf32> to vector<1x32xf32>
    %c0_6 = arith.constant 0 : index
    %c0_7 = arith.constant 0 : index
    %c0_8 = arith.constant 0 : index
    %17 = vector.load %arg9[%c0_6, %c0_7, %c0_8] : memref<1x1x64xf32, #tpu.memory_space<vmem>>, vector<1x1x64xf32>
    %18 = vector.shape_cast %17 : vector<1x1x64xf32> to vector<1x64xf32>
    %c0_9 = arith.constant 0 : index
    %c0_10 = arith.constant 0 : index
    %c0_11 = arith.constant 0 : index
    %c0_12 = arith.constant 0 : index
    %19 = vector.load %arg5[%c0_9, %c0_10, %c0_11, %c0_12] : memref<1x4x32x32xbf16, #tpu.memory_space<vmem>>, vector<1x1x32x32xbf16>
    %20 = vector.shape_cast %19 : vector<1x1x32x32xbf16> to vector<32x32xbf16>
    %c0_13 = arith.constant 0 : index
    %c1 = arith.constant 1 : index
    %c0_14 = arith.constant 0 : index
    %c0_15 = arith.constant 0 : index
    %21 = vector.load %arg5[%c0_13, %c1, %c0_14, %c0_15] : memref<1x4x32x32xbf16, #tpu.memory_space<vmem>>, vector<1x1x32x32xbf16>
    %22 = vector.shape_cast %21 : vector<1x1x32x32xbf16> to vector<32x32xbf16>
    %c0_16 = arith.constant 0 : index
    %c2 = arith.constant 2 : index
    %c0_17 = arith.constant 0 : index
    %c0_18 = arith.constant 0 : index
    %23 = vector.load %arg5[%c0_16, %c2, %c0_17, %c0_18] : memref<1x4x32x32xbf16, #tpu.memory_space<vmem>>, vector<1x1x32x32xbf16>
    %24 = vector.shape_cast %23 : vector<1x1x32x32xbf16> to vector<32x32xbf16>
    %c0_19 = arith.constant 0 : index
    %c3 = arith.constant 3 : index
    %c0_20 = arith.constant 0 : index
    %c0_21 = arith.constant 0 : index
    %25 = vector.load %arg5[%c0_19, %c3, %c0_20, %c0_21] : memref<1x4x32x32xbf16, #tpu.memory_space<vmem>>, vector<1x1x32x32xbf16>
    %26 = vector.shape_cast %25 : vector<1x1x32x32xbf16> to vector<32x32xbf16>
    %cst = arith.constant dense<0.000000e+00> : vector<16x32xf32>
    %27 = tpu.matmul %5, %20, %cst {dimension_numbers = #tpu.dot_dimension_numbers<[1], [0], [0], [1], [0, 0, 1, 1], [], []>} : vector<16x32xbf16>, vector<32x32xbf16>, vector<16x32xf32> -> vector<16x32xf32>
    %28 = vector.broadcast %8 : vector<1x32xf32> to vector<16x32xf32>
    %29 = arith.addf %27, %28 : vector<16x32xf32>
    %cst_22 = arith.constant dense<0.000000e+00> : vector<16x32xf32>
    %30 = tpu.matmul %5, %22, %cst_22 {dimension_numbers = #tpu.dot_dimension_numbers<[1], [0], [0], [1], [0, 0, 1, 1], [], []>} : vector<16x32xbf16>, vector<32x32xbf16>, vector<16x32xf32> -> vector<16x32xf32>
    %31 = vector.broadcast %9 : vector<1x32xf32> to vector<16x32xf32>
    %32 = arith.addf %30, %31 : vector<16x32xf32>
    %cst_23 = arith.constant dense<0.000000e+00> : vector<16x32xf32>
    %33 = tpu.matmul %5, %24, %cst_23 {dimension_numbers = #tpu.dot_dimension_numbers<[1], [0], [0], [1], [0, 0, 1, 1], [], []>} : vector<16x32xbf16>, vector<32x32xbf16>, vector<16x32xf32> -> vector<16x32xf32>
    %34 = vector.broadcast %10 : vector<1x32xf32> to vector<16x32xf32>
    %35 = arith.addf %33, %34 : vector<16x32xf32>
    %36 = arith.truncf %29 : vector<16x32xf32> to vector<16x32xbf16>
    %37 = vector.shape_cast %36 : vector<16x32xbf16> to vector<2x8x32xbf16>
    %38 = arith.truncf %32 : vector<16x32xf32> to vector<16x32xbf16>
    %39 = vector.shape_cast %38 : vector<16x32xbf16> to vector<2x8x32xbf16>
    %40 = arith.truncf %35 : vector<16x32xf32> to vector<16x32xbf16>
    %41 = vector.shape_cast %40 : vector<16x32xbf16> to vector<2x8x32xbf16>
    %c0_24 = arith.constant 0 : index
    %c0_25 = arith.constant 0 : index
    %c0_26 = arith.constant 0 : index
    %42 = vector.load %arg3[%c0_24, %c0_25, %c0_26] : memref<2x1x8xf32, #tpu.memory_space<vmem>>, vector<2x1x8xf32>
    %43 = vector.shape_cast %42 : vector<2x1x8xf32> to vector<2x1x8xf32>
    %44 = vector.broadcast %43 : vector<2x1x8xf32> to vector<2x8x8xf32>
    %cst_27 = arith.constant 0.000000e+00 : f32
    %45 = vector.broadcast %cst_27 : f32 to vector<16x32xf32>
    %46 = vector.extract_strided_slice %37 {offsets = [0, 0, 0], sizes = [2, 8, 16], strides = [1, 1, 1]} : vector<2x8x32xbf16> to vector<2x8x16xbf16>
    %47 = vector.extract_strided_slice %39 {offsets = [0, 0, 0], sizes = [2, 8, 16], strides = [1, 1, 1]} : vector<2x8x32xbf16> to vector<2x8x16xbf16>
    %48 = vector.extract_strided_slice %41 {offsets = [0, 0, 0], sizes = [2, 8, 16], strides = [1, 1, 1]} : vector<2x8x32xbf16> to vector<2x8x16xbf16>
    "tpu.trace_start"() <{level = 10 : i32, message = "bld,bmd->blm"}> : () -> ()
    %cst_28 = arith.constant dense<0.000000e+00> : vector<2x8x8xf32>
    %49 = tpu.matmul %46, %47, %cst_28 {dimension_numbers = #tpu.dot_dimension_numbers<[2], [2], [1], [1], [0, 0, 0, 1, 1, 1], [0], [0]>} : vector<2x8x16xbf16>, vector<2x8x16xbf16>, vector<2x8x8xf32> -> vector<2x8x8xf32>
    "tpu.trace_stop"() : () -> ()
    %cst_29 = arith.constant 2.500000e-01 : f32
    %50 = vector.broadcast %cst_29 : f32 to vector<2x8x8xf32>
    %51 = arith.mulf %49, %50 : vector<2x8x8xf32>
    %52 = arith.addf %51, %44 : vector<2x8x8xf32>
    %cst_30 = arith.constant dense<0xFF800000> : vector<2x8xf32>
    %53 = vector.multi_reduction <maximumf>, %52, %cst_30 [2] : vector<2x8x8xf32> to vector<2x8xf32>
    %54 = vector.shape_cast %53 : vector<2x8xf32> to vector<2x8x1xf32>
    %55 = vector.broadcast %54 : vector<2x8x1xf32> to vector<2x8x8xf32>
    %56 = arith.subf %52, %55 : vector<2x8x8xf32>
    %57 = math.exp %56 : vector<2x8x8xf32>
    %cst_31 = arith.constant dense<0.000000e+00> : vector<2x8xf32>
    %58 = vector.multi_reduction <add>, %57, %cst_31 [2] : vector<2x8x8xf32> to vector<2x8xf32>
    %59 = vector.shape_cast %58 : vector<2x8xf32> to vector<2x8x1xf32>
    %60 = tpu.reciprocal %59 {approx = true} : vector<2x8x1xf32> -> vector<2x8x1xf32>
    %61 = vector.broadcast %60 : vector<2x8x1xf32> to vector<2x8x8xf32>
    %62 = arith.mulf %57, %61 : vector<2x8x8xf32>
    %63 = arith.truncf %62 : vector<2x8x8xf32> to vector<2x8x8xbf16>
    "tpu.trace_start"() <{level = 10 : i32, message = "blm,bmd->bld"}> : () -> ()
    %cst_32 = arith.constant dense<0.000000e+00> : vector<2x8x16xf32>
    %64 = tpu.matmul %63, %48, %cst_32 {dimension_numbers = #tpu.dot_dimension_numbers<[2], [1], [1], [2], [0, 0, 0, 1, 1, 2], [0], [0]>} : vector<2x8x8xbf16>, vector<2x8x16xbf16>, vector<2x8x16xf32> -> vector<2x8x16xf32>
    "tpu.trace_stop"() : () -> ()
    %65 = arith.truncf %64 : vector<2x8x16xf32> to vector<2x8x16xbf16>
    %66 = vector.shape_cast %65 : vector<2x8x16xbf16> to vector<16x16xbf16>
    %67 = vector.extract_strided_slice %26 {offsets = [0, 0], sizes = [16, 32], strides = [1, 1]} : vector<32x32xbf16> to vector<16x32xbf16>
    %cst_33 = arith.constant dense<0.000000e+00> : vector<16x32xf32>
    %68 = tpu.matmul %66, %67, %cst_33 {dimension_numbers = #tpu.dot_dimension_numbers<[1], [0], [0], [1], [0, 0, 1, 1], [], []>} : vector<16x16xbf16>, vector<16x32xbf16>, vector<16x32xf32> -> vector<16x32xf32>
    %69 = arith.addf %45, %68 : vector<16x32xf32>
    %70 = vector.extract_strided_slice %37 {offsets = [0, 0, 16], sizes = [2, 8, 16], strides = [1, 1, 1]} : vector<2x8x32xbf16> to vector<2x8x16xbf16>
    %71 = vector.extract_strided_slice %39 {offsets = [0, 0, 16], sizes = [2, 8, 16], strides = [1, 1, 1]} : vector<2x8x32xbf16> to vector<2x8x16xbf16>
    %72 = vector.extract_strided_slice %41 {offsets = [0, 0, 16], sizes = [2, 8, 16], strides = [1, 1, 1]} : vector<2x8x32xbf16> to vector<2x8x16xbf16>
    "tpu.trace_start"() <{level = 10 : i32, message = "bld,bmd->blm"}> : () -> ()
    %cst_34 = arith.constant dense<0.000000e+00> : vector<2x8x8xf32>
    %73 = tpu.matmul %70, %71, %cst_34 {dimension_numbers = #tpu.dot_dimension_numbers<[2], [2], [1], [1], [0, 0, 0, 1, 1, 1], [0], [0]>} : vector<2x8x16xbf16>, vector<2x8x16xbf16>, vector<2x8x8xf32> -> vector<2x8x8xf32>
    "tpu.trace_stop"() : () -> ()
    %cst_35 = arith.constant 2.500000e-01 : f32
    %74 = vector.broadcast %cst_35 : f32 to vector<2x8x8xf32>
    %75 = arith.mulf %73, %74 : vector<2x8x8xf32>
    %76 = arith.addf %75, %44 : vector<2x8x8xf32>
    %cst_36 = arith.constant dense<0xFF800000> : vector<2x8xf32>
    %77 = vector.multi_reduction <maximumf>, %76, %cst_36 [2] : vector<2x8x8xf32> to vector<2x8xf32>
    %78 = vector.shape_cast %77 : vector<2x8xf32> to vector<2x8x1xf32>
    %79 = vector.broadcast %78 : vector<2x8x1xf32> to vector<2x8x8xf32>
    %80 = arith.subf %76, %79 : vector<2x8x8xf32>
    %81 = math.exp %80 : vector<2x8x8xf32>
    %cst_37 = arith.constant dense<0.000000e+00> : vector<2x8xf32>
    %82 = vector.multi_reduction <add>, %81, %cst_37 [2] : vector<2x8x8xf32> to vector<2x8xf32>
    %83 = vector.shape_cast %82 : vector<2x8xf32> to vector<2x8x1xf32>
    %84 = tpu.reciprocal %83 {approx = true} : vector<2x8x1xf32> -> vector<2x8x1xf32>
    %85 = vector.broadcast %84 : vector<2x8x1xf32> to vector<2x8x8xf32>
    %86 = arith.mulf %81, %85 : vector<2x8x8xf32>
    %87 = arith.truncf %86 : vector<2x8x8xf32> to vector<2x8x8xbf16>
    "tpu.trace_start"() <{level = 10 : i32, message = "blm,bmd->bld"}> : () -> ()
    %cst_38 = arith.constant dense<0.000000e+00> : vector<2x8x16xf32>
    %88 = tpu.matmul %87, %72, %cst_38 {dimension_numbers = #tpu.dot_dimension_numbers<[2], [1], [1], [2], [0, 0, 0, 1, 1, 2], [0], [0]>} : vector<2x8x8xbf16>, vector<2x8x16xbf16>, vector<2x8x16xf32> -> vector<2x8x16xf32>
    "tpu.trace_stop"() : () -> ()
    %89 = arith.truncf %88 : vector<2x8x16xf32> to vector<2x8x16xbf16>
    %90 = vector.shape_cast %89 : vector<2x8x16xbf16> to vector<16x16xbf16>
    %91 = vector.extract_strided_slice %26 {offsets = [16, 0], sizes = [16, 32], strides = [1, 1]} : vector<32x32xbf16> to vector<16x32xbf16>
    %cst_39 = arith.constant dense<0.000000e+00> : vector<16x32xf32>
    %92 = tpu.matmul %90, %91, %cst_39 {dimension_numbers = #tpu.dot_dimension_numbers<[1], [0], [0], [1], [0, 0, 1, 1], [], []>} : vector<16x16xbf16>, vector<16x32xbf16>, vector<16x32xf32> -> vector<16x32xf32>
    %93 = arith.addf %69, %92 : vector<16x32xf32>
    %94 = vector.broadcast %11 : vector<1x32xf32> to vector<16x32xf32>
    %95 = arith.addf %93, %94 : vector<16x32xf32>
    %96 = arith.addf %95, %4 : vector<16x32xf32>
    %cst_40 = arith.constant dense<0.000000e+00> : vector<16xf32>
    %97 = vector.multi_reduction <add>, %96, %cst_40 [1] : vector<16x32xf32> to vector<16xf32>
    %98 = vector.shape_cast %97 : vector<16xf32> to vector<16x1xf32>
    %cst_41 = arith.constant 3.200000e+01 : f32
    %99 = vector.broadcast %cst_41 : f32 to vector<16x1xf32>
    %100 = arith.divf %98, %99 : vector<16x1xf32>
    %101 = vector.broadcast %100 : vector<16x1xf32> to vector<16x32xf32>
    %102 = arith.subf %96, %101 : vector<16x32xf32>
    %103 = arith.mulf %102, %102 : vector<16x32xf32>
    %cst_42 = arith.constant dense<0.000000e+00> : vector<16xf32>
    %104 = vector.multi_reduction <add>, %103, %cst_42 [1] : vector<16x32xf32> to vector<16xf32>
    %105 = vector.shape_cast %104 : vector<16xf32> to vector<16x1xf32>
    %cst_43 = arith.constant 3.200000e+01 : f32
    %106 = vector.broadcast %cst_43 : f32 to vector<16x1xf32>
    %107 = arith.divf %105, %106 : vector<16x1xf32>
    %cst_44 = arith.constant 9.99999996E-13 : f32
    %108 = vector.broadcast %cst_44 : f32 to vector<16x1xf32>
    %109 = arith.addf %107, %108 : vector<16x1xf32>
    %110 = math.rsqrt %109 : vector<16x1xf32>
    %111 = vector.broadcast %110 : vector<16x1xf32> to vector<16x32xf32>
    %112 = arith.mulf %102, %111 : vector<16x32xf32>
    %113 = vector.broadcast %12 : vector<1x32xf32> to vector<16x32xf32>
    %114 = arith.mulf %112, %113 : vector<16x32xf32>
    %115 = vector.broadcast %13 : vector<1x32xf32> to vector<16x32xf32>
    %116 = arith.addf %114, %115 : vector<16x32xf32>
    %117 = arith.truncf %116 : vector<16x32xf32> to vector<16x32xbf16>
    %c0_45 = arith.constant 0 : index
    %c0_46 = arith.constant 0 : index
    %c0_47 = arith.constant 0 : index
    %118 = vector.load %arg6[%c0_45, %c0_46, %c0_47] : memref<1x32x64xbf16, #tpu.memory_space<vmem>>, vector<1x32x64xbf16>
    %119 = vector.shape_cast %118 : vector<1x32x64xbf16> to vector<32x64xbf16>
    %cst_48 = arith.constant dense<0.000000e+00> : vector<16x64xf32>
    %120 = tpu.matmul %117, %119, %cst_48 {dimension_numbers = #tpu.dot_dimension_numbers<[1], [0], [0], [1], [0, 0, 1, 1], [], []>} : vector<16x32xbf16>, vector<32x64xbf16>, vector<16x64xf32> -> vector<16x64xf32>
    %121 = vector.broadcast %18 : vector<1x64xf32> to vector<16x64xf32>
    %122 = arith.addf %120, %121 : vector<16x64xf32>
    %cst_49 = arith.constant 5.000000e-01 : f32
    %123 = vector.broadcast %cst_49 : f32 to vector<16x64xf32>
    %124 = arith.mulf %123, %122 : vector<16x64xf32>
    %125 = arith.mulf %122, %122 : vector<16x64xf32>
    %126 = arith.mulf %125, %122 : vector<16x64xf32>
    %cst_50 = arith.constant 4.471500e-02 : f32
    %127 = vector.broadcast %cst_50 : f32 to vector<16x64xf32>
    %128 = arith.mulf %127, %126 : vector<16x64xf32>
    %129 = arith.addf %122, %128 : vector<16x64xf32>
    %cst_51 = arith.constant 0.797884583 : f32
    %130 = vector.broadcast %cst_51 : f32 to vector<16x64xf32>
    %131 = arith.mulf %130, %129 : vector<16x64xf32>
    %132 = math.tanh %131 : vector<16x64xf32>
    %cst_52 = arith.constant 1.000000e+00 : f32
    %133 = vector.broadcast %cst_52 : f32 to vector<16x64xf32>
    %134 = arith.addf %133, %132 : vector<16x64xf32>
    %135 = arith.mulf %124, %134 : vector<16x64xf32>
    %136 = arith.truncf %135 : vector<16x64xf32> to vector<16x64xbf16>
    %c0_53 = arith.constant 0 : index
    %c0_54 = arith.constant 0 : index
    %c0_55 = arith.constant 0 : index
    %137 = vector.load %arg7[%c0_53, %c0_54, %c0_55] : memref<1x64x32xbf16, #tpu.memory_space<vmem>>, vector<1x64x32xbf16>
    %138 = vector.shape_cast %137 : vector<1x64x32xbf16> to vector<64x32xbf16>
    %cst_56 = arith.constant dense<0.000000e+00> : vector<16x32xf32>
    %139 = tpu.matmul %136, %138, %cst_56 {dimension_numbers = #tpu.dot_dimension_numbers<[1], [0], [0], [1], [0, 0, 1, 1], [], []>} : vector<16x64xbf16>, vector<64x32xbf16>, vector<16x32xf32> -> vector<16x32xf32>
    %140 = vector.broadcast %14 : vector<1x32xf32> to vector<16x32xf32>
    %141 = arith.addf %139, %140 : vector<16x32xf32>
    %142 = arith.addf %141, %116 : vector<16x32xf32>
    %cst_57 = arith.constant dense<0.000000e+00> : vector<16xf32>
    %143 = vector.multi_reduction <add>, %142, %cst_57 [1] : vector<16x32xf32> to vector<16xf32>
    %144 = vector.shape_cast %143 : vector<16xf32> to vector<16x1xf32>
    %cst_58 = arith.constant 3.200000e+01 : f32
    %145 = vector.broadcast %cst_58 : f32 to vector<16x1xf32>
    %146 = arith.divf %144, %145 : vector<16x1xf32>
    %147 = vector.broadcast %146 : vector<16x1xf32> to vector<16x32xf32>
    %148 = arith.subf %142, %147 : vector<16x32xf32>
    %149 = arith.mulf %148, %148 : vector<16x32xf32>
    %cst_59 = arith.constant dense<0.000000e+00> : vector<16xf32>
    %150 = vector.multi_reduction <add>, %149, %cst_59 [1] : vector<16x32xf32> to vector<16xf32>
    %151 = vector.shape_cast %150 : vector<16xf32> to vector<16x1xf32>
    %cst_60 = arith.constant 3.200000e+01 : f32
    %152 = vector.broadcast %cst_60 : f32 to vector<16x1xf32>
    %153 = arith.divf %151, %152 : vector<16x1xf32>
    %cst_61 = arith.constant 9.99999996E-13 : f32
    %154 = vector.broadcast %cst_61 : f32 to vector<16x1xf32>
    %155 = arith.addf %153, %154 : vector<16x1xf32>
    %156 = math.rsqrt %155 : vector<16x1xf32>
    %157 = vector.broadcast %156 : vector<16x1xf32> to vector<16x32xf32>
    %158 = arith.mulf %148, %157 : vector<16x32xf32>
    %159 = vector.broadcast %15 : vector<1x32xf32> to vector<16x32xf32>
    %160 = arith.mulf %158, %159 : vector<16x32xf32>
    %161 = vector.broadcast %16 : vector<1x32xf32> to vector<16x32xf32>
    %162 = arith.addf %160, %161 : vector<16x32xf32>
    %163 = vector.shape_cast %162 : vector<16x32xf32> to vector<2x8x32xf32>
    %c0_62 = arith.constant 0 : index
    %c0_63 = arith.constant 0 : index
    %c0_64 = arith.constant 0 : index
    %164 = vector.load %arg11[%c0_62, %c0_63, %c0_64] : memref<2x8x32xf32, #tpu.memory_space<vmem>>, vector<2x8x32xf32>
    tpu.vector_store %arg11[%c0_62, %c0_63, %c0_64], %163 {strides = array<i32>} : memref<2x8x32xf32, #tpu.memory_space<vmem>>, vector<2x8x32xf32>,
    %c1_i32 = arith.constant 1 : i32
    %165 = arith.cmpi eq, %arg1, %c1_i32 : i32
    %166 = arith.extui %165 : i1 to i32
    %c0_i32_65 = arith.constant 0 : i32
    %167 = arith.cmpi ne, %166, %c0_i32_65 : i32
    scf.if %167 {
      %c0_66 = arith.constant 0 : index
      %c0_67 = arith.constant 0 : index
      %c0_68 = arith.constant 0 : index
      %168 = vector.load %arg4[%c0_66, %c0_67, %c0_68] : memref<2x8x1xf32, #tpu.memory_space<vmem>>, vector<2x8x1xf32>
      %169 = vector.shape_cast %162 : vector<16x32xf32> to vector<2x8x32xf32>
      %170 = vector.broadcast %168 : vector<2x8x1xf32> to vector<2x8x32xf32>
      %171 = arith.mulf %169, %170 : vector<2x8x32xf32>
      %cst_69 = arith.constant dense<0.000000e+00> : vector<2x32xf32>
      %172 = vector.multi_reduction <add>, %171, %cst_69 [1] : vector<2x8x32xf32> to vector<2x32xf32>
      %cst_70 = arith.constant 1.250000e-01 : f32
      %173 = vector.broadcast %cst_70 : f32 to vector<2x32xf32>
      %174 = arith.mulf %172, %173 : vector<2x32xf32>
      %c0_71 = arith.constant 0 : index
      %c0_72 = arith.constant 0 : index
      %175 = vector.load %arg10[%c0_71, %c0_72] : memref<2x32xf32, #tpu.memory_space<vmem>>, vector<2x32xf32>
      tpu.vector_store %arg10[%c0_71, %c0_72], %174 {strides = array<i32>} : memref<2x32xf32, #tpu.memory_space<vmem>>, vector<2x32xf32>,
    } else {
    }
    return
  }
  func.func @transform_0(%arg0: i32, %arg1: i32) -> (i32, i32, i32) {
    %c0_i32 = arith.constant 0 : i32
    %c0_i32_0 = arith.constant 0 : i32
    %c0_i32_1 = arith.constant 0 : i32
    return %arg0, %c0_i32, %c0_i32_0 : i32, i32, i32
  }
  func.func @transform_1(%arg0: i32, %arg1: i32) -> (i32, i32, i32) {
    %c0_i32 = arith.constant 0 : i32
    %c0_i32_0 = arith.constant 0 : i32
    %c0_i32_1 = arith.constant 0 : i32
    return %arg0, %c0_i32, %c0_i32_0 : i32, i32, i32
  }
  func.func @transform_2(%arg0: i32, %arg1: i32) -> (i32, i32, i32) {
    %c0_i32 = arith.constant 0 : i32
    %c0_i32_0 = arith.constant 0 : i32
    %c0_i32_1 = arith.constant 0 : i32
    return %arg0, %c0_i32, %c0_i32_0 : i32, i32, i32
  }
  func.func @transform_3(%arg0: i32, %arg1: i32) -> (i32, i32, i32, i32) {
    %c0_i32 = arith.constant 0 : i32
    %c0_i32_0 = arith.constant 0 : i32
    %c0_i32_1 = arith.constant 0 : i32
    %c0_i32_2 = arith.constant 0 : i32
    return %arg1, %c0_i32, %c0_i32_0, %c0_i32_1 : i32, i32, i32, i32
  }
  func.func @transform_4(%arg0: i32, %arg1: i32) -> (i32, i32, i32) {
    %c0_i32 = arith.constant 0 : i32
    %c0_i32_0 = arith.constant 0 : i32
    %c0_i32_1 = arith.constant 0 : i32
    return %arg1, %c0_i32, %c0_i32_0 : i32, i32, i32
  }
  func.func @transform_5(%arg0: i32, %arg1: i32) -> (i32, i32, i32) {
    %c0_i32 = arith.constant 0 : i32
    %c0_i32_0 = arith.constant 0 : i32
    %c0_i32_1 = arith.constant 0 : i32
    return %arg1, %c0_i32, %c0_i32_0 : i32, i32, i32
  }
  func.func @transform_6(%arg0: i32, %arg1: i32) -> (i32, i32, i32) {
    %c0_i32 = arith.constant 0 : i32
    %c0_i32_0 = arith.constant 0 : i32
    %c0_i32_1 = arith.constant 0 : i32
    return %arg1, %c0_i32, %c0_i32_0 : i32, i32, i32
  }
  func.func @transform_7(%arg0: i32, %arg1: i32) -> (i32, i32, i32) {
    %c0_i32 = arith.constant 0 : i32
    %c0_i32_0 = arith.constant 0 : i32
    %c0_i32_1 = arith.constant 0 : i32
    return %arg1, %c0_i32, %c0_i32_0 : i32, i32, i32
  }
  func.func @transform_8(%arg0: i32, %arg1: i32) -> (i32, i32) {
    %c0_i32 = arith.constant 0 : i32
    %c0_i32_0 = arith.constant 0 : i32
    return %arg0, %c0_i32 : i32, i32
  }
}

</mosaic_0001>

<bundles_post_ra>
// kernel: tpu_custom_call.1
= control target key start
LH: loop header
LB: loop body
LE: loop exit
PB: predicated region body
PF: predicated region fallthrough
CT: control target
= control target key end

     0   :  { %13 = vsyncpa [#allocation4], 0  ;;  %s2434_s0 = inlined_call_operand.vmem [shape: bf16[2,8,32], index: 0, kind: input, shape index: {}]   ;;  %s2435_s1 = inlined_call_operand.hbm [shape: f32[2,1,8], index: 1, kind: input, shape index: {}]   ;;  %s2436_s2 = inlined_call_operand.vmem [shape: f32[2,8,1], index: 2, kind: input, shape index: {}]   ;;  %s2437_s3 = inlined_call_operand.vmem [shape: bf16[2,4,32,32], index: 3, kind: input, shape index: {}]   ;;  %s2438_s4 = inlined_call_operand.vmem [shape: bf16[2,32,64], index: 4, kind: input, shape index: {}]   ;;  %s2439_s5 = inlined_call_operand.vmem [shape: bf16[2,64,32], index: 5, kind: input, shape index: {}]   ;;  %s2440_s6 = inlined_call_operand.vmem [shape: f32[2,9,32], index: 6, kind: input, shape index: {}]   ;;  %s2441_s7 = inlined_call_operand.vmem [shape: f32[2,1,64], index: 7, kind: input, shape index: {}]   ;;  %s2442_s8 = inlined_call_operand.hbm [shape: f32[2,32], index: 8, kind: output, shape index: {}]  }
   0x1   :  { %14 = vsyncpa [#allocation5], 0  ;;  %s2151_s27 = smov 0   ;;  %s2153_s28 = smov 0  }
   0x2   :  { %s2155_s29 = smov 0  }
   0x3 LB: > { %s1693_s30 = sadd.s32 4294967295, %s2096_s29   ;;  %s29_s9 = sadd.s32 1, %s2092_s28  ;;  %s2096_s29 = sphi %s2155_s29, %s20_s29   ;;  %s2092_s28 = sphi %s2153_s28, %s2447_s28   ;;  %s2088_s27 = sphi %s2151_s27, %s2446_s27  }
   0x4   : > { %p30_p0 = scmp.ge.s32.totalorder %s29_s9, 2  ;;  %p1694_p1 = scmp.ge.s32.totalorder %s2096_s29, 1 }
   0x5   : > { %p271_p2 = scmp.lt.s32.totalorder %s2096_s29, 3  ;;  %p2178_p4 = scmp.eq.s32.totalorder %s1693_s30, 0 }
   0x6   : > { %s2449_s9 = smov (%p30_p0, %s29_s9), 0  ;;  %s2098_s12 = smov [#allocation3]  }
   0x7   : > { %p2172_p3 = pnand %p1694_p1, %p271_p2  ;;  %s295_s13 = sshll.u32 %s2098_s12, 4  ;;  %s296_s13 = int_to_ptr.vmem [resolvable:$true] %s295_s13 }
   0x8   : > { %s2027_s14 = scalar_lea.vmem %s296_s13, 32  ;;  %p2035_p11 = scmp.lt.s32.totalorder %s296_s13, %s296_s13 }
   0x9   : > { %p1933_p5 = pneg %p2172_p3  ;;  %p2028_p8 = scmp.ne.s32.totalorder %s296_s13, %s2027_s14 }
   0xa   : > { %p2036_p12 = scmp.lt.s32.totalorder %s2027_s14, %s2027_s14 }
   0xb   : > { %p1934_p6 = pnand %p2178_p4, %p1933_p5 }
   0xc   : > { %p2037_p13 = por %p2036_p12, %p2035_p11 }
   0xd   : > { %p2018_p7 = pneg %p1934_p6 }
   0xf   : > { %p2030_p9 = pnand %p2028_p8, %p2018_p7 }
  0x11   : > { %p2031_p10 = pneg %p2030_p9 }
  0x13   : > { %p2038_p0 = pnand %p2037_p13, %p2031_p10 }
  0x15   : > { %2041 = shalt.err (!%p2038_p0)
}
  0x16   : > { %s2099_s15 = smov 16   ;;  %s2100_s16 = smov 1  }
  0x17   : > { %1936 = dma.hbm_to_vmem [thread:$0]  (!%p1934_p6), %s2435_s1, 32, %s296_s13, [#allocation4], %s2099_s15, %s2099_s15, %s2100_s16  }
  0x18   : > { %358 = sbr.rel (%p2172_p3) target bundleno = 2909 (0xb5d), region = 52 }
  0x1d   : > { %2079 = dma.done.wait (%p2178_p4), [#allocation4], 32  }
  0x1e   : > { %2081 = vsyncadd (%p2178_p4), [#allocation4], 4294967264  ;;  %p428_p1 = scmp.lt.s32.totalorder %s2088_s27, 1  ;;  %p1709_p2 = scmp.ne.s32.totalorder %s2088_s27, 0 }
  0x20   : > { %s2197_s19 = scalar_select %p428_p1, %s2088_s27, 1 }
  0x21   : > { %455 = sbr.rel (%p1709_p2) target bundleno = 42 (0x2a), region = 60 }
  0x22   : > { %s1768_s20 = sshll.u32 %s2197_s19, 6  ;;  %s1769_s21 = sshll.u32 %s2197_s19, 4 }
  0x23   : > { %s2204_s24 = scalar_lea.vmem %s2437_s3, %s1768_s20  ;;  %s2209_s10 = scalar_lea.vmem %s2438_s4, %s1769_s21 }
  0x24   : > { %s1770_s11 = sshll.u32 %s2197_s19, 5  ;;  %s2215_s14 = scalar_lea.vmem %s2440_s6, %s1769_s21 }
  0x25   : > { %s2220_s17 = scalar_lea.vmem %s2439_s5, %s1770_s11  ;;  %s450_s20 = scalar_lea.vmem %s2441_s7, %s2197_s19 }
  0x26   : > { %v1781_v0 = vld [vmem:[%s2434_s0] sm:$0xff]   ;;  %vm460_vm0 = vcmask 261120  }
  0x27   : > { %v1782_v1 = vunpack.c.l.bf16 %v1781_v0  ;;  %v1783_v2 = vunpack.c.h.bf16 %v1781_v0 }
  0x29   : > { %461 = vst.msk [vmem:[#allocation2] sm:$0xff] %vm460_vm0, %v1782_v1  ;;  %462 = vst.msk [vmem:[#allocation2 + $0x8] sm:$0xff] %vm460_vm0, %v1783_v2 }
  0x2a PF: > { %v1973_v3 = vld [vmem:[%s2204_s24 + $0x8] sm:$0xff]   ;;  %v2101_v4 = vmov 0.0   ;;  %v1974_v5 = vld [vmem:[%s2204_s24] sm:$0xff]   ;;  %vm2102_vm1 = vmmov 0   ;;  %vm504_vm2 = vcmask 261120   ;;  %v1975_v8 = vld [vmem:[%s2204_s24 + $0x18] sm:$0xff]   ;;  %v488_v13 = vlaneseq }
  0x2b   : > { %1821 = vmatprep.subr.bf16.mxu1 %v2101_v4  ;;  %1837 = vmatprep.subr.bf16.mxu0 %v2101_v4  ;;  %v1976_v10 = vld [vmem:[%s2204_s24 + $0x10] sm:$0xff]   ;;  %v1977_v11 = vld [vmem:[%s2204_s24 + $0x28] sm:$0xff]   ;;  %v1978_v12 = vld [vmem:[%s2204_s24 + $0x20] sm:$0xff]   ;;  %vm695_vm3 = vcmask 130048   ;;  %s2103_s21 = smov 112   ;;  %vm820_vm4 = vcmask 1043456  }
  0x2c   : > { %1822 = vmatpush3.bf16.msra.mxu1 %v1973_v3  ;;  %1825 = vmatprep.mubr.msk.bf16.mxu1 %vm2102_vm1, %v2101_v4  ;;  %v2263_v14 = vshrl.u32 %v488_v13, 7  ;;  %v2267_v18 = vld [vmem:[%s2215_s14] sm:$0xff]  ;;  %v2295_v51 = vld [vmem:[#allocation3] ss:$0 sm:$0xff]  ;;  %vm792_vm5 = vcmask 64512   ;;  %vm1417_vm6 = vcmask 523264  }
  0x2d   : > { %1823 = vmatprep.subr.bf16.mxu1 %v2101_v4  ;;  %1841 = vmatprep.mubr.msk.bf16.mxu0 %vm2102_vm1, %v2101_v4  ;;  %v2298_v57 = vld [vmem:[#allocation3 + $0x1] ss:$0 sm:$0xff]  ;;  %p1763_p3 = scmp.ne.s32.totalorder %s2088_s27, 1 }
  0x2e   : > { %1838 = vmatpush3.bf16.msra.mxu0 %v1977_v11  ;;  %v551_v16 = vsub.s32 1, %v2263_v14  ;;  %v490_v22 = vsub.s32 0, %v2263_v14  ;;  %v608_v38 = vsub.s32 2, %v2263_v14 }
  0x2f   : > { %1839 = vmatprep.subr.bf16.mxu0 %v2101_v4 }
  0x30   : > { %v2236_v6 = vld [vmem:[#allocation2] sm:$0xff]  ;;  %v2238_v7 = vld [vmem:[#allocation2 + $0x8] sm:$0xff]  ;;  %1824 = vmatpush3.bf16.msra.mxu1 %v1974_v5  ;;  %v552_v20 = vrot.slane %v2267_v18, %v551_v16  ;;  %v491_v26 = vrot.slane %v2267_v18, %v490_v22  ;;  %v609_v39 = vrot.slane %v2267_v18, %v608_v38 }
  0x31   : > { %v465_v9 = vpack.c.bf16 %v2238_v7, %v2236_v6  ;;  %1829 = vmatprep.subr.bf16.mxu1 %v2101_v4 }
  0x32   : > { %1840 = vmatpush3.bf16.msra.mxu0 %v1978_v12 }
  0x33   : > { %1826 = vmatmul.mubr.msk.bf16.vlgmr.msra.gmra.mxu1 %vm504_vm2, %v465_v9  ;;  %1851 = vmatprep.subr.bf16.mxu0 %v2101_v4 }
  0x34   : > { %1830 = vmatpush3.bf16.msra.mxu1 %v1975_v8  ;;  %1833 = vmatprep.mubr.msk.bf16.mxu1 %vm2102_vm1, %v2101_v4 }
  0x35   : > { %1831 = vmatprep.subr.bf16.mxu1 %v2101_v4  ;;  %1842 = vmatmul.mubr.msk.bf16.vlgmr.msra.gmra.mxu0 %vm504_vm2, %v465_v9 }
  0x36   : > { %1853 = vmatprep.mubr.msk.bf16.mxu0 %vm2102_vm1, %v2101_v4 }
  0x38   : > { %1832 = vmatpush3.bf16.msra.mxu1 %v1976_v10 }
  0x39   : > { %1845 = vmatprep.subr.bf16.mxu1 %v2101_v4 }
  0x3b   : > { %1834 = vmatmul.mubr.msk.bf16.vlgmr.msra.gmra.mxu1 %vm504_vm2, %v465_v9 }
  0x3c   : > { %1847 = vmatprep.mubr.msk.bf16.mxu1 %vm2102_vm1, %v2101_v4 }
  0xf3   : > { %v542_v15 = vpop.f32.mrf.mxu1 }
  0xf4   : > { %v543_v32 = vadd.f32 %v542_v15, %v491_v26 }
  0xf5   : > { %v1827_v17 = vpop.f32.mrf.mxu1  ;;  %v656_v40 = vpop.f32.mrf.mxu0 }
  0xf6   : > { %v1772_v35 = vpack.c.bf16 %v543_v32, %v543_v32  ;;  %v657_v41 = vadd.f32 %v656_v40, %v609_v39 }
  0xf7   : > { %v545_v19 = vpop.f32.mrf.mxu1  ;;  %v1843_v42 = vpop.f32.mrf.mxu0 }
  0xf8   : > { %v546_v36 = vadd.f32 %v545_v19, %v491_v26  ;;  %v2285_v43 = vpack.c.bf16 %v657_v41, %v657_v41 }
  0xf9   : > { %v1828_v21 = vpop.f32.mrf.mxu1  ;;  %v659_v44 = vpop.f32.mrf.mxu0 }
  0xfa   : > { %v1773_v37 = vpack.c.bf16 %v546_v36, %v546_v36  ;;  %v822_v45 = vsel %vm820_vm4, %v2285_v43, 0  ;;  %v660_v46 = vadd.f32 %v659_v44, %v609_v39 }
  0xfb   : > { %v599_v23 = vpop.f32.mrf.mxu1  ;;  %v1844_v47 = vpop.f32.mrf.mxu0 }
  0xfc   : > { %v600_v24 = vadd.f32 %v599_v23, %v552_v20  ;;  %v2289_v48 = vpack.c.bf16 %v660_v46, %v660_v46 }
  0xfd   : > { %v1835_v25 = vpop.f32.mrf.mxu1 }
  0xfe   : > { %v1774_v27 = vpack.c.bf16 %v600_v24, %v600_v24  ;;  %v868_v49 = vsel %vm820_vm4, %v2289_v48, 0 }
  0xff   : > { %v602_v28 = vpop.f32.mrf.mxu1 }
 0x100   : > { %v700_v29 = vsel %vm695_vm3, %v1774_v27, 0  ;;  %v603_v30 = vadd.f32 %v602_v28, %v552_v20 }
 0x101   : > { %v1836_v31 = vpop.f32.mrf.mxu1  ;;  %1846 = vmatpush3.bf16.xpose.msra.mxu1 %v700_v29 }
 0x102   : > { %v1775_v33 = vpack.c.bf16 %v603_v30, %v603_v30  ;;  %1857 = vmatprep.subr.bf16.mxu1 %v2101_v4 }
 0x104   : > { %v746_v34 = vsel %vm695_vm3, %v1775_v33, 0  ;;  %964 = vrot.lane.b32.xlu1 %v1775_v33, %s2103_s21 }
 0x105   : > { %1852 = vmatpush3.bf16.xpose.msra.mxu0 %v746_v34 }
 0x106   : > { %1863 = vmatprep.subr.bf16.mxu0 %v2101_v4 }
 0x108   : > { %1848 = vmatmul.mubr.msk.bf16.vlgmr.msra.gmra.mxu1 %vm695_vm3, %v1772_v35 }
 0x109   : > { %1859 = vmatprep.mubr.msk.bf16.mxu1 %vm2102_vm1, %v2101_v4  ;;  %1858 = vmatpush3.bf16.msra.mxu1 %v822_v45 }
 0x10a   : > { %1869 = vmatprep.subr.bf16.mxu1 %v2101_v4 }
 0x10c   : > { %1854 = vmatmul.mubr.msk.bf16.vlgmr.msra.gmra.mxu0 %vm695_vm3, %v1773_v37 }
 0x10d   : > { %1865 = vmatprep.mubr.msk.bf16.mxu0 %vm2102_vm1, %v2101_v4  ;;  %1864 = vmatpush3.bf16.msra.mxu0 %v868_v49 }
 0x10e   : > { %1875 = vmatprep.subr.bf16.mxu0 %v2101_v4 }
 0x176   : > { %v965_v16 = vpop.permute.xlu1 %964 }
 0x177   : > { %v970_v28 = vsel %vm695_vm3, %v965_v16, 0  ;;  %v1979_v16 = vld [vmem:[%s2204_s24 + $0x30] sm:$0xff]  }
 0x1c8   : > { %v736_v50 = vpop.f32.mrf.mxu1 }
 0x1c9   : > { %v788_v52 = vmul.f32 0.25, %v736_v50 }
 0x1ca   : > { %v1849_v53 = vpop.f32.mrf.mxu1 }
 0x1cb   : > { %v790_v54 = vadd.f32 %v2295_v51, %v788_v52 }
 0x1cc   : > { %v739_v55 = vpop.f32.mrf.mxu1  ;;  %v782_v56 = vpop.f32.mrf.mxu0 }
 0x1cd   : > { %v789_v58 = vmul.f32 0.25, %v782_v56  ;;  %v793_v59 = vsel %vm792_vm5, %v790_v54, -inf }
 0x1ce   : > { %v1855_v60 = vpop.f32.mrf.mxu0  ;;  %794 = vmax.xlane.f32.xlu0 %v793_v59  ;;  %v1850_v61 = vpop.f32.mrf.mxu1 }
 0x1cf   : > { %v791_v62 = vadd.f32 %v2298_v57, %v789_v58 }
 0x1d0   : > { %v785_v63 = vpop.f32.mrf.mxu0 }
 0x1d1   : > { %v796_v0 = vsel %vm792_vm5, %v791_v62, -inf }
 0x1d2   : > { %v1856_v1 = vpop.f32.mrf.mxu0  ;;  %797 = vmax.xlane.f32.xlu0 %v796_v0 }
 0x1e8   : > { %914 = vrot.lane.b32.xlu0 %v1774_v27, %s2103_s21 }
 0x257   : > { %v795_v2 = vpop.xlane.xlu0 %794 }
 0x258   : > { %v799_v3 = vsub.f32 %v790_v54, %v795_v2 }
 0x25a   : > { %v801_v5 = vmul.f32 1.442695, %v799_v3 }
 0x25b   : > { %v798_v8 = vpop.xlane.xlu0 %797 }
 0x25c   : > { %1987 = vpow2.f32 %v801_v5  ;;  %v800_v9 = vsub.f32 %v791_v62, %v798_v8 }
 0x25e   : > { %v803_v10 = vmul.f32 1.442695, %v800_v9 }
 0x25f   : > { %v915_v22 = vpop.permute.xlu0 %914 }
 0x260   : > { %1989 = vpow2.f32 %v803_v10  ;;  %v920_v25 = vsel %vm695_vm3, %v915_v22, 0 }
 0x269   : > { %v1988_v11 = vpop.eup %1987 }
 0x26a   : > { %v805_v12 = vsel %vm792_vm5, %v1988_v11, 0.0 }
 0x26b   : > { %806 = vadd.xlane.f32.xlu1 %v805_v12 }
 0x26d   : > { %v1990_v13 = vpop.eup %1989 }
 0x26e   : > { %v808_v15 = vsel %vm792_vm5, %v1990_v13, 0.0 }
 0x26f   : > { %809 = vadd.xlane.f32.xlu1 %v808_v15 }
 0x280   : > { %912 = vrot.lane.b32.xlu1 %v1772_v35, %s2103_s21 }
 0x284   : > { %962 = vrot.lane.b32.xlu1 %v1773_v37, %s2103_s21 }
 0x2f4   : > { %v807_v17 = vpop.xlane.xlu1 %806 }
 0x2f5   : > { %1991 = vrcp.f32 %v807_v17  ;;  %v1980_v17 = vld [vmem:[%s2204_s24 + $0x38] sm:$0xff]  }
 0x2f8   : > { %v810_v19 = vpop.xlane.xlu1 %809 }
 0x2f9   : > { %1993 = vrcp.f32 %v810_v19 }
 0x2fc   : > { %v913_v29 = vpop.permute.xlu1 %912 }
 0x300   : > { %v963_v30 = vpop.permute.xlu1 %962 }
 0x302   : > { %v1992_v20 = vpop.eup %1991 }
 0x303   : > { %v813_v21 = vmul.f32 %v1992_v20, %v1988_v11 }
 0x305   : > { %v815_v23 = vpack.c.bf16 %v813_v21, %v813_v21 }
 0x306   : > { %v1994_v24 = vpop.eup %1993 }
 0x307   : > { %1860 = vmatmul.mubr.msk.bf16.vlgmr.msra.gmra.mxu1 %vm792_vm5, %v815_v23  ;;  %v814_v26 = vmul.f32 %v1994_v24, %v1990_v13 }
 0x308   : > { %1870 = vmatpush3.bf16.xpose.msra.mxu1 %v920_v25  ;;  %1871 = vmatprep.mubr.msk.bf16.mxu1 %vm2102_vm1, %v2101_v4 }
 0x309   : > { %v816_v27 = vpack.c.bf16 %v814_v26, %v814_v26  ;;  %1881 = vmatprep.subr.bf16.mxu1 %v2101_v4 }
 0x30b   : > { %1866 = vmatmul.mubr.msk.bf16.vlgmr.msra.gmra.mxu0 %vm792_vm5, %v816_v27 }
 0x30c   : > { %1876 = vmatpush3.bf16.xpose.msra.mxu0 %v970_v28  ;;  %1877 = vmatprep.mubr.msk.bf16.mxu0 %vm2102_vm1, %v2101_v4 }
 0x30d   : > { %1887 = vmatprep.subr.bf16.mxu0 %v2101_v4 }
 0x30f   : > { %1872 = vmatmul.mubr.msk.bf16.vlgmr.msra.gmra.mxu1 %vm695_vm3, %v913_v29 }
 0x310   : > { %1883 = vmatprep.mubr.msk.bf16.mxu1 %vm2102_vm1, %v2101_v4 }
 0x313   : > { %1878 = vmatmul.mubr.msk.bf16.vlgmr.msra.gmra.mxu0 %vm695_vm3, %v963_v30 }
 0x314   : > { %1889 = vmatprep.mubr.msk.bf16.mxu0 %vm2102_vm1, %v2101_v4 }
 0x3c7   : > { %v2324_v31 = vpop.f32.mrf.mxu1 }
 0x3c9   : > { %v1861_v32 = vpop.f32.mrf.mxu1 }
 0x3ca   : > { %v1250_v32 = vsub.s32 3, %v2263_v14 }
 0x3cb   : > { %v861_v33 = vpop.f32.mrf.mxu1  ;;  %v2326_v34 = vpop.f32.mrf.mxu0 }
 0x3cc   : > { %v1779_v35 = vpack.c.bf16 %v2326_v34, %v2324_v31  ;;  %v1251_v33 = vrot.slane %v2267_v18, %v1250_v32 }
 0x3cd   : > { %v1862_v36 = vpop.f32.mrf.mxu1  ;;  %v1867_v37 = vpop.f32.mrf.mxu0 }
 0x3cf   : > { %v907_v38 = vpop.f32.mrf.mxu0  ;;  %v956_v39 = vpop.f32.mrf.mxu1 }
 0x3d0   : > { %v1012_v40 = vmul.f32 0.25, %v956_v39 }
 0x3d1   : > { %v1868_v41 = vpop.f32.mrf.mxu0  ;;  %v1873_v42 = vpop.f32.mrf.mxu1 }
 0x3d2   : > { %v1014_v44 = vadd.f32 %v2295_v51, %v1012_v40 }
 0x3d3   : > { %v959_v45 = vpop.f32.mrf.mxu1  ;;  %v1006_v46 = vpop.f32.mrf.mxu0 }
 0x3d4   : > { %v1013_v47 = vmul.f32 0.25, %v1006_v46  ;;  %v1016_v49 = vsel %vm792_vm5, %v1014_v44, -inf }
 0x3d5   : > { %v1879_v50 = vpop.f32.mrf.mxu0  ;;  %1017 = vmax.xlane.f32.xlu0 %v1016_v49  ;;  %v1874_v52 = vpop.f32.mrf.mxu1 }
 0x3d6   : > { %v1015_v53 = vadd.f32 %v2298_v57, %v1013_v47 }
 0x3d7   : > { %v1009_v54 = vpop.f32.mrf.mxu0 }
 0x3d8   : > { %v1019_v55 = vsel %vm792_vm5, %v1015_v53, -inf }
 0x3d9   : > { %1020 = vmax.xlane.f32.xlu1 %v1019_v55  ;;  %v1880_v56 = vpop.f32.mrf.mxu0 }
 0x3ea   : > { %1088 = vrot.lane.b32.xlu1 %v2289_v48, %s2103_s21 }
 0x45e   : > { %v1018_v58 = vpop.xlane.xlu0 %1017 }
 0x45f   : > { %v1022_v51 = vsub.f32 %v1014_v44, %v1018_v58 }
 0x461   : > { %v1024_v59 = vmul.f32 1.442695, %v1022_v51  ;;  %v1981_v51 = vld [vmem:[%s2209_s10 + $0x8] sm:$0xff]  }
 0x462   : > { %v1021_v60 = vpop.xlane.xlu1 %1020 }
 0x463   : > { %1995 = vpow2.f32 %v1024_v59  ;;  %v1023_v61 = vsub.f32 %v1015_v53, %v1021_v60 }
 0x465   : > { %v1026_v62 = vmul.f32 1.442695, %v1023_v61 }
 0x466   : > { %v1089_v63 = vpop.permute.xlu1 %1088 }
 0x467   : > { %1997 = vpow2.f32 %v1026_v62  ;;  %v1094_v0 = vsel %vm820_vm4, %v1089_v63, 0 }
 0x468   : > { %1888 = vmatpush3.bf16.msra.mxu0 %v1094_v0 }
 0x469   : > { %1899 = vmatprep.subr.bf16.mxu0 %v2101_v4 }
 0x470   : > { %v1996_v57 = vpop.eup %1995 }
 0x471   : > { %v1028_v1 = vsel %vm792_vm5, %v1996_v57, 0.0 }
 0x472   : > { %1029 = vadd.xlane.f32.xlu0 %v1028_v1 }
 0x474   : > { %v1998_v2 = vpop.eup %1997 }
 0x475   : > { %v1031_v48 = vsel %vm792_vm5, %v1998_v2, 0.0 }
 0x476   : > { %1032 = vadd.xlane.f32.xlu0 %v1031_v48 }
 0x48c   : > { %1040 = vrot.lane.b32.xlu0 %v2285_v43, %s2103_s21 }
 0x4fb   : > { %v1030_v3 = vpop.xlane.xlu0 %1029 }
 0x4fc   : > { %1999 = vrcp.f32 %v1030_v3  ;;  %v1291_v3 = vsub.s32 5, %v2263_v14 }
 0x4ff   : > { %v1033_v5 = vpop.xlane.xlu0 %1032 }
 0x500   : > { %2001 = vrcp.f32 %v1033_v5 }
 0x503   : > { %v1041_v8 = vpop.permute.xlu0 %1040 }
 0x504   : > { %v1046_v9 = vsel %vm820_vm4, %v1041_v8, 0 }
 0x505   : > { %1882 = vmatpush3.bf16.msra.mxu1 %v1046_v9 }
 0x506   : > { %1893 = vmatprep.subr.bf16.mxu1 %v2101_v4 }
 0x509   : > { %v2000_v10 = vpop.eup %1999 }
 0x50a   : > { %v1036_v11 = vmul.f32 %v2000_v10, %v1996_v57  ;;  %v1285_v57 = vsub.s32 4, %v2263_v14  ;;  %v1292_v10 = vrot.slane %v2267_v18, %v1291_v3 }
 0x50c   : > { %v1038_v12 = vpack.c.bf16 %v1036_v11, %v1036_v11  ;;  %v1286_v48 = vrot.slane %v2267_v18, %v1285_v57 }
 0x50d   : > { %v2002_v13 = vpop.eup %2001 }
 0x50e   : > { %1884 = vmatmul.mubr.msk.bf16.vlgmr.msra.gmra.mxu1 %vm792_vm5, %v1038_v12  ;;  %v1037_v15 = vmul.f32 %v2002_v13, %v1998_v2 }
 0x50f   : > { %1895 = vmatprep.mubr.msk.bf16.mxu1 %vm2102_vm1, %v2101_v4  ;;  %1894 = vmatpush3.bf16.msra.mxu1 %v1980_v17  ;;  %v1985_v17 = vld [vmem:[%s2220_s17 + $0x8] sm:$0xff]  }
 0x510   : > { %v1039_v43 = vpack.c.bf16 %v1037_v15, %v1037_v15  ;;  %1905 = vmatprep.subr.bf16.mxu1 %v2101_v4 }
 0x512   : > { %1890 = vmatmul.mubr.msk.bf16.vlgmr.msra.gmra.mxu0 %vm792_vm5, %v1039_v43  ;;  %v1984_v43 = vld [vmem:[%s2220_s17 + $0x10] sm:$0xff]  }
 0x513   : > { %1900 = vmatpush3.bf16.msra.mxu0 %v1979_v16  ;;  %1901 = vmatprep.mubr.msk.bf16.mxu0 %vm2102_vm1, %v2101_v4  ;;  %v1983_v16 = vld [vmem:[%s2220_s17 + $0x18] sm:$0xff]  }
 0x514   : > { %1913 = vmatprep.subr.bf16.mxu0 %v2101_v4 }
 0x51a   : > { %1902 = vmatmul.mubr.msk.bf16.vlgmr.msra.gmra.mxu0 %vm695_vm3, %v1779_v35 }
 0x51b   : > { %1921 = vmatprep.mubr.msk.bf16.mxu0 %vm2102_vm1, %v2101_v4  ;;  %1914 = vmatpush3.bf16.msra.mxu0 %v1983_v16  ;;  %v1762_v16 = vld [vmem:[%s2215_s14 + $0x8] ss:$0 sm:$0xff] }
 0x51c   : > { %1915 = vmatprep.subr.bf16.mxu0 %v2101_v4 }
 0x51f   : > { %1916 = vmatpush3.bf16.msra.mxu0 %v1984_v43 }
 0x520   : > { %1917 = vmatprep.subr.bf16.mxu0 %v2101_v4 }
 0x523   : > { %1918 = vmatpush3.bf16.msra.mxu0 %v1985_v17 }
 0x524   : > { %1919 = vmatprep.subr.bf16.mxu0 %v2101_v4 }
 0x5ce   : > { %v1082_v19 = vpop.f32.mrf.mxu1 }
 0x5d0   : > { %v1885_v20 = vpop.f32.mrf.mxu1 }
 0x5d1   : > { %v1753_v20 = vld [vmem:[%s450_s20] ss:$0 sm:$0xff] }
 0x5d2   : > { %v1085_v21 = vpop.f32.mrf.mxu1  ;;  %v1130_v22 = vpop.f32.mrf.mxu0 }
 0x5d3   : > { %v1778_v23 = vpack.c.bf16 %v1130_v22, %v1082_v19  ;;  %v1986_v19 = vld [vmem:[%s2220_s17] sm:$0xff]  }
 0x5d4   : > { %v1886_v24 = vpop.f32.mrf.mxu1  ;;  %v1891_v25 = vpop.f32.mrf.mxu0  ;;  %1920 = vmatpush3.bf16.msra.mxu0 %v1986_v19 }
 0x5d5   : > { %1896 = vmatmul.mubr.msk.bf16.vlgmr.msra.gmra.mxu1 %vm695_vm3, %v1778_v23 }
 0x5d6   : > { %v1133_v26 = vpop.f32.mrf.mxu0  ;;  %1909 = vmatprep.mubr.msk.bf16.mxu1 %vm2102_vm1, %v2101_v4  ;;  %1906 = vmatpush3.bf16.msra.mxu1 %v1981_v51 }
 0x5d7   : > { %1907 = vmatprep.subr.bf16.mxu1 %v2101_v4 }
 0x5d8   : > { %v1892_v27 = vpop.f32.mrf.mxu0 }
 0x5da   : > { %v1241_v28 = vpop.f32.mrf.mxu0 }
 0x5dc   : > { %v1903_v29 = vpop.f32.mrf.mxu0 }
 0x5de   : > { %v1244_v30 = vpop.f32.mrf.mxu0 }
 0x5e0   : > { %v1904_v31 = vpop.f32.mrf.mxu0 }
 0x695   : > { %v1186_v34 = vpop.f32.mrf.mxu1 }
 0x696   : > { %v1242_v35 = vadd.f32 %v1241_v28, %v1186_v34 }
 0x697   : > { %v1897_v36 = vpop.f32.mrf.mxu1 }
 0x698   : > { %v1252_v37 = vadd.f32 %v1251_v33, %v1242_v35 }
 0x699   : > { %v1189_v38 = vpop.f32.mrf.mxu1 }
 0x69a   : > { %v1245_v39 = vadd.f32 %v1244_v30, %v1189_v38  ;;  %v1254_v40 = vadd.f32 %v1252_v37, %v2236_v6 }
 0x69b   : > { %v1898_v41 = vpop.f32.mrf.mxu1 }
 0x69c   : > { %v1253_v42 = vadd.f32 %v1251_v33, %v1245_v39  ;;  %v1256_v44 = vsel %vm504_vm2, %v1254_v40, 0.0 }
 0x69d   : > { %1257 = vadd.xlane.f32.xlu1 %v1256_v44 }
 0x69e   : > { %v1255_v45 = vadd.f32 %v1253_v42, %v2238_v7  ;;  %v1982_v7 = vld [vmem:[%s2209_s10] sm:$0xff]  }
 0x69f   : > { %1908 = vmatpush3.bf16.msra.mxu1 %v1982_v7 }
 0x6a0   : > { %v1259_v46 = vsel %vm504_vm2, %v1255_v45, 0.0 }
 0x6a1   : > { %1260 = vadd.xlane.f32.xlu0 %v1259_v46  ;;  %v1391_v46 = vsub.s32 6, %v2263_v14 }
 0x726   : > { %v1258_v47 = vpop.xlane.xlu1 %1257 }
 0x727   : > { %v1263_v49 = vmul.f32 0.03125, %v1258_v47  ;;  %v1392_v47 = vrot.slane %v2267_v18, %v1391_v46 }
 0x729   : > { %v1265_v50 = vsub.f32 %v1254_v40, %v1263_v49 }
 0x72a   : > { %v1261_v52 = vpop.xlane.xlu0 %1260 }
 0x72b   : > { %v1264_v53 = vmul.f32 0.03125, %v1261_v52  ;;  %v1267_v54 = vmul.f32 %v1265_v50, %v1265_v50 }
 0x72d   : > { %v1266_v55 = vsub.f32 %v1255_v45, %v1264_v53  ;;  %v1269_v6 = vsel %vm504_vm2, %v1267_v54, 0.0 }
 0x72e   : > { %1270 = vadd.xlane.f32.xlu0 %v1269_v6 }
 0x72f   : > { %v1268_v56 = vmul.f32 %v1266_v55, %v1266_v55 }
 0x731   : > { %v1272_v58 = vsel %vm504_vm2, %v1268_v56, 0.0 }
 0x732   : > { %1273 = vadd.xlane.f32.xlu1 %v1272_v58 }
 0x7b7   : > { %v1271_v59 = vpop.xlane.xlu0 %1270 }
 0x7b8   : > { %v1275_v60 = vmul.f32 0.03125, %v1271_v59 }
 0x7ba   : > { %v1277_v61 = vadd.f32 1e-12, %v1275_v60 }
 0x7bb   : > { %v1274_v62 = vpop.xlane.xlu1 %1273 }
 0x7bc   : > { %2003 = vrsqrt.f32 %v1277_v61  ;;  %v1276_v63 = vmul.f32 0.03125, %v1274_v62 }
 0x7be   : > { %v1278_v0 = vadd.f32 1e-12, %v1276_v63 }
 0x7c0   : > { %2005 = vrsqrt.f32 %v1278_v0 }
 0x7c9   : > { %v2004_v1 = vpop.eup %2003 }
 0x7ca   : > { %v1281_v2 = vmul.f32 %v2004_v1, %v1265_v50 }
 0x7cc   : > { %v1287_v9 = vmul.f32 %v1286_v48, %v1281_v2 }
 0x7cd   : > { %v2006_v5 = vpop.eup %2005 }
 0x7ce   : > { %v1282_v8 = vmul.f32 %v2006_v5, %v1266_v55  ;;  %v1293_v12 = vadd.f32 %v1292_v10, %v1287_v9 }
 0x7d0   : > { %v1288_v11 = vmul.f32 %v1286_v48, %v1282_v8 }
 0x7d2   : > { %v1294_v13 = vadd.f32 %v1292_v10, %v1288_v11  ;;  %v1492_v11 = vsub.s32 7, %v2263_v14 }
 0x7d4   : > { %v1295_v15 = vpack.c.bf16 %v1294_v13, %v1293_v12 }
 0x7d6   : > { %1910 = vmatmul.mubr.msk.bf16.vlgmr.msra.gmra.mxu1 %vm504_vm2, %v1295_v15 }
 0x896   : > { %v1355_v21 = vpop.f32.mrf.mxu1 }
 0x897   : > { %v1356_v22 = vadd.f32 %v1753_v20, %v1355_v21 }
 0x898   : > { %v1911_v23 = vpop.f32.mrf.mxu1 }
 0x899   : > { %v1364_v24 = vmul.f32 %v1356_v22, %v1356_v22  ;;  %v1362_v39 = vmul.f32 0.5, %v1356_v22 }
 0x89a   : > { %v1358_v25 = vpop.f32.mrf.mxu1 }
 0x89b   : > { %v1366_v26 = vmul.f32 %v1364_v24, %v1356_v22  ;;  %v1359_v27 = vadd.f32 %v1753_v20, %v1358_v25 }
 0x89c   : > { %v1912_v28 = vpop.f32.mrf.mxu1 }
 0x89d   : > { %v1368_v29 = vmul.f32 0.044715, %v1366_v26  ;;  %v1365_v30 = vmul.f32 %v1359_v27, %v1359_v27  ;;  %v1363_v40 = vmul.f32 0.5, %v1359_v27 }
 0x89f   : > { %v1370_v31 = vadd.f32 %v1368_v29, %v1356_v22  ;;  %v1367_v32 = vmul.f32 %v1365_v30, %v1359_v27 }
 0x8a1   : > { %v1372_v4 = vmul.f32 0.7978846, %v1370_v31  ;;  %v1369_v33 = vmul.f32 0.044715, %v1367_v32 }
 0x8a3   : > { %2007 = vtanh.f32 %v1372_v4  ;;  %v1371_v34 = vadd.f32 %v1369_v33, %v1359_v27 }
 0x8a5   : > { %v1373_v35 = vmul.f32 0.7978846, %v1371_v34 }
 0x8a7   : > { %2009 = vtanh.f32 %v1373_v35 }
 0x8b0   : > { %v2008_v36 = vpop.eup %2007 }
 0x8b1   : > { %v1376_v37 = vadd.f32 1.0, %v2008_v36 }
 0x8b3   : > { %v1378_v42 = vmul.f32 %v1376_v37, %v1362_v39 }
 0x8b4   : > { %v2010_v38 = vpop.eup %2009 }
 0x8b5   : > { %v1377_v41 = vadd.f32 1.0, %v2010_v38 }
 0x8b7   : > { %v1379_v44 = vmul.f32 %v1377_v41, %v1363_v40 }
 0x8b9   : > { %v1380_v45 = vpack.c.bf16 %v1379_v44, %v1378_v42 }
 0x8bb   : > { %1922 = vmatmul.mubr.msk.bf16.vlgmr.msra.gmra.mxu0 %vm1417_vm6, %v1380_v45 }
 0x97b   : > { %v1455_v49 = vpop.f32.mrf.mxu0 }
 0x97c   : > { %v1456_v50 = vadd.f32 %v1455_v49, %v1392_v47 }
 0x97d   : > { %v1923_v52 = vpop.f32.mrf.mxu0 }
 0x97e   : > { %v1462_v53 = vadd.f32 %v1456_v50, %v1293_v12  ;;  %v1493_v12 = vrot.slane %v2267_v18, %v1492_v11 }
 0x97f   : > { %v1458_v54 = vpop.f32.mrf.mxu0 }
 0x980   : > { %v1459_v55 = vadd.f32 %v1458_v54, %v1392_v47  ;;  %v1464_v6 = vsel %vm504_vm2, %v1462_v53, 0.0 }
 0x981   : > { %1465 = vadd.xlane.f32.xlu0 %v1464_v6  ;;  %v1924_v56 = vpop.f32.mrf.mxu0 }
 0x982   : > { %v1463_v58 = vadd.f32 %v1459_v55, %v1294_v13 }
 0x984   : > { %v1467_v51 = vsel %vm504_vm2, %v1463_v58, 0.0 }
 0x985   : > { %1468 = vadd.xlane.f32.xlu1 %v1467_v51 }
 0xa0a   : > { %v1466_v7 = vpop.xlane.xlu0 %1465 }
 0xa0b   : > { %v1470_v59 = vmul.f32 0.03125, %v1466_v7 }
 0xa0d   : > { %v1472_v60 = vsub.f32 %v1462_v53, %v1470_v59 }
 0xa0e   : > { %v1469_v61 = vpop.xlane.xlu1 %1468 }
 0xa0f   : > { %v1471_v62 = vmul.f32 0.03125, %v1469_v61  ;;  %v1474_v63 = vmul.f32 %v1472_v60, %v1472_v60 }
 0xa11   : > { %v1473_v0 = vsub.f32 %v1463_v58, %v1471_v62  ;;  %v1476_v57 = vsel %vm504_vm2, %v1474_v63, 0.0 }
 0xa12   : > { %1477 = vadd.xlane.f32.xlu0 %v1476_v57 }
 0xa13   : > { %v1475_v1 = vmul.f32 %v1473_v0, %v1473_v0 }
 0xa15   : > { %v1479_v2 = vsel %vm504_vm2, %v1475_v1, 0.0 }
 0xa16   : > { %1480 = vadd.xlane.f32.xlu1 %v1479_v2 }
 0xa9b   : > { %v1478_v48 = vpop.xlane.xlu0 %1477 }
 0xa9c   : > { %v1482_v3 = vmul.f32 0.03125, %v1478_v48 }
 0xa9e   : > { %v1484_v5 = vadd.f32 1e-12, %v1482_v3 }
 0xa9f   : > { %v1481_v8 = vpop.xlane.xlu1 %1480 }
 0xaa0   : > { %2011 = vrsqrt.f32 %v1484_v5  ;;  %v1483_v9 = vmul.f32 0.03125, %v1481_v8 }
 0xaa2   : > { %v1485_v10 = vadd.f32 1e-12, %v1483_v9 }
 0xaa4   : > { %2013 = vrsqrt.f32 %v1485_v10 }
 0xaad   : > { %v2012_v13 = vpop.eup %2011 }
 0xaae   : > { %v1488_v15 = vmul.f32 %v2012_v13, %v1472_v60 }
 0xab0   : > { %v1494_v43 = vmul.f32 %v1493_v12, %v1488_v15 }
 0xab1   : > { %v2014_v17 = vpop.eup %2013 }
 0xab2   : > { %v1500_v19 = vadd.f32 %v1762_v16, %v1494_v43  ;;  %v1489_v20 = vmul.f32 %v2014_v17, %v1473_v0 }
 0xab4   : > { %1502 = vst.msk [vmem:[#allocation2] sm:$0xff] %vm504_vm2, %v1500_v19  ;;  %v1495_v21 = vmul.f32 %v1493_v12, %v1489_v20  ;;  %1507 = sbr.rel (%p1763_p3) target bundleno = 2894 (0xb4e), region = 64 }
 0xab6   : > { %v1501_v22 = vadd.f32 %v1762_v16, %v1495_v21 }
 0xab8   : > { %1503 = vst.msk [vmem:[#allocation2 + $0x8] sm:$0xff] %vm504_vm2, %v1501_v22 }
 0xab9   : > { %v1508_v14 = vld [vmem:[%s2436_s2] sm:$0xff]  ;;  %v2104_v18 = vmov 0   ;;  %v1509_v23 = vld [vmem:[%s2436_s2 + $0x8] sm:$0xff]  ;;  %vm1540_vm7 = vcmask 1041409   ;;  %vm1543_vm8 = vcmask 254976  }
 0xaba   : > { %2015 = vset.pattern.permute.xlu0 %v2104_v18 }
 0xabb   : > { %1512 = vperm.xlu0 %2015, %v1508_v14  }
 0xabf   : > { %1517 = vperm.xlu0 %2015, %v1509_v23  }
 0xb36   : > { %v1513_v24 = vpop.permute.xlu0 %1512 }
 0xb37   : > { %v1520_v25 = vmul.f32 %v1513_v24, %v1500_v19 }
 0xb39   : > { %v1522_v26 = vsel %vm504_vm2, %v1520_v25, 0.0 }
 0xb3a   : > { %v1523_v27 = vrot.slane %v1522_v26, 4  ;;  %v1518_v28 = vpop.permute.xlu0 %1517 }
 0xb3b   : > { %v1521_v29 = vmul.f32 %v1518_v28, %v1501_v22 }
 0xb3c   : > { %v1524_v30 = vadd.f32 %v1523_v27, %v1522_v26 }
 0xb3d   : > { %v1529_v31 = vsel %vm504_vm2, %v1521_v29, 0.0 }
 0xb3e   : > { %v1525_v32 = vrot.slane %v1524_v30, 2  ;;  %v1530_v4 = vrot.slane %v1529_v31, 4 }
 0xb40   : > { %v1526_v33 = vadd.f32 %v1525_v32, %v1524_v30  ;;  %v1531_v34 = vadd.f32 %v1530_v4, %v1529_v31 }
 0xb42   : > { %v1527_v35 = vrot.slane %v1526_v33, 1  ;;  %v1532_v36 = vrot.slane %v1531_v34, 2 }
 0xb44   : > { %v1533_v37 = vadd.f32 %v1532_v36, %v1531_v34  ;;  %v1528_v38 = vadd.f32 %v1527_v35, %v1526_v33 }
 0xb46   : > { %v1534_v39 = vrot.slane %v1533_v37, 1  ;;  %v1536_v41 = vmul.f32 0.125, %v1528_v38 }
 0xb48   : > { %v1535_v40 = vadd.f32 %v1534_v39, %v1533_v37 }
 0xb4a   : > { %v1537_v42 = vmul.f32 0.125, %v1535_v40 }
 0xb4c   : > { %v1541_v44 = vsel %vm1540_vm7, %v1537_v42, %v1536_v41 }
 0xb4d   : > { %1544 = vst.msk [vmem:[#allocation6] sm:$0x3] %vm1543_vm8, %v1541_v44 }
 0xb4e PF: > { %p2410_p4 = scmp.eq.s32.totalorder %s1693_s30, 1  ;;  %s2105_s13 = smov [#allocation6]  }
 0xb4f   : > { %s1554_s14 = sshll.u32 %s2105_s13, 4  ;;  %s1555_s14 = int_to_ptr.vmem [resolvable:$true] %s1554_s14 }
 0xb50   : > { %s2042_s15 = scalar_lea.vmem %s1555_s14, 32  ;;  %p2049_p8 = scmp.lt.s32.totalorder %s1555_s14, %s1555_s14 }
 0xb51   : > { %p2043_p5 = scmp.ne.s32.totalorder %s1555_s14, %s2042_s15  ;;  %p2050_p9 = scmp.lt.s32.totalorder %s2042_s15, %s2042_s15 }
 0xb53   : > { %p2044_p6 = pnand %p2043_p5, %p2410_p4  ;;  %p2051_p10 = por %p2050_p9, %p2049_p8 }
 0xb55   : > { %p2045_p7 = pneg %p2044_p6 }
 0xb57   : > { %p2052_p11 = pnand %p2051_p10, %p2045_p7 }
 0xb59   : > { %2055 = shalt.err (!%p2052_p11)
}
 0xb5a   : > { %1930 = dma.vmem_to_hbm [thread:$0]  (%p2410_p4), %s1555_s14, 32, %s2442_s8, [#allocation5]  }
 0xb5b   : > { %2083 = dma.done.wait (%p2410_p4), [#allocation5], 32  }
 0xb5c   : > { %2085 = vsyncadd (%p2410_p4), [#allocation5], 4294967264 }
 0xb5d PF: > { %s20_s29 = sadd.s32 1, %s2096_s29   ;;  %s2446_s27 = smov %s2092_s28 }
 0xb5e   : > { %p17_p12 = scmp.ge.s32.totalorder %s20_s29, 4   ;;  %s2447_s28 = smov %s2449_s9 }
 0xb60   :  { %19 = sbr.rel (!%p17_p12) target bundleno = 3 (0x3), region = 115 }
 0xb65   :  { %1567 = vsyncpa [#allocation4], 1 }
 0xb66   :  { %1569 = vsyncpa [#allocation4 + $0x1], 1 }
 0xb67   :  { %1570 = vsyncpa [#allocation5], 1 }
 0xb68   :  { %1572 = vsyncpa [#allocation5 + $0x1], 1 }

</bundles_post_ra>
